<compile_context>
chip_gen: v7x
topology: tpu7x:2x2x1
jax: 0.10.0
libtpu: 0.0.40
codegen_flags: <defaults>
</compile_context>

<pallas_src>
import jax
import jax.numpy as jnp
from jax.experimental import pallas as pl
from jax.experimental.pallas import tpu as pltpu


def mmoe_kernel(x_ref,
                w1c_ref, b1c_ref,      # fused expert fc1: (D, E*H), (1, E*H)
                w2c_ref, eb2_ref,      # fused expert fc2: (E*H, O), (E, O)
                wgc_ref,               # fused gate weights: (D, T*E)
                tw1_ref, tb1_ref,      # tower fc1: (T, O, Th), (T, Th)
                tw2r_ref, tb2_ref,     # tower fc2: (T, Th), (T, 1)
                out_ref):              # (B, T)
    x = x_ref[...]                                                        # (B, D) f32
    B = x.shape[0]
    E, O = eb2_ref.shape
    T = tw1_ref.shape[0]
    EH = w2c_ref.shape[0]
    H = EH // E

    # ---- all experts' first layer in ONE MXU matmul: (B,D) @ (D,E*H) ----
    h_all = jnp.dot(x, w1c_ref[...], preferred_element_type=jnp.float32) + b1c_ref[...]
    h_all = jnp.maximum(h_all, 0.0)                                       # (B, E*H)

    # ---- all tasks' gate logits in ONE MXU matmul: (B,D) @ (D,T*E) ----
    logits_all = jnp.dot(x, wgc_ref[...], preferred_element_type=jnp.float32)  # (B, T*E)

    w2c = w2c_ref[...]    # (E*H, O)  hoisted out of the task loop
    eb2 = eb2_ref[...]    # (E, O)

    cols = []
    for t in range(T):    # tasks is a tiny static constant -> unrolled
        # softmax over experts; approx reciprocal goes to the EUP slot
        lg = logits_all[:, t * E:(t + 1) * E]                             # (B, E)
        lg = lg - jnp.max(lg, axis=1, keepdims=True)
        p = jnp.exp(lg)
        gate = p * pl.reciprocal(jnp.sum(p, axis=1, keepdims=True), approx=True)

        # gate-weight each expert's hidden block (VPU), then ONE fused fc2 matmul.
        #   ti = sum_e gate[:,e] * (h_e @ W2_e + b2_e)
        #      = (gate-weighted h_all) @ W2_cat + gate @ eb2
        gh = jnp.concatenate(
            [h_all[:, e * H:(e + 1) * H] * gate[:, e:e + 1] for e in range(E)],
            axis=1)                                                       # (B, E*H)
        ti = (jnp.dot(gh, w2c, preferred_element_type=jnp.float32)
              + jnp.dot(gate, eb2, preferred_element_type=jnp.float32))   # (B, O)

        # tower: fc1 -> relu -> fc2 (out dim 1 as a VPU reduction) -> sigmoid
        th = (jnp.dot(ti, tw1_ref[t], preferred_element_type=jnp.float32)
              + tb1_ref[t:t + 1, :])                                      # (B, Th), 2-D bias
        th = jnp.maximum(th, 0.0)
        z = (jnp.sum(th * tw2r_ref[t:t + 1, :], axis=1, keepdims=True)
             + tb2_ref[t:t + 1, :])                                       # (B, 1)
        cols.append(1.0 / (1.0 + jnp.exp(-z)))                            # sigmoid, 16 elems total

    # lane-dense-ish output (no trailing dim of 1); wrapper restores (T, B, 1)
    out_ref[...] = jnp.concatenate(cols, axis=1)                          # (B, T)


def mmoe_forward(x, params):
    (ew1, eb1, ew2, eb2, wg, tw1, tb1, tw2, tb2) = params
    E, D, H = ew1.shape
    O = ew2.shape[2]
    T = wg.shape[0]
    Th = tw1.shape[2]
    B = x.shape[0]

    # Repack weights once (cheap XLA ops) so the kernel does large fused matmuls.
    w1c = jnp.transpose(ew1, (1, 0, 2)).reshape(D, E * H)   # column block e = expert e's fc1
    b1c = eb1.reshape(1, E * H)
    w2c = ew2.reshape(E * H, O)                              # row block e    = expert e's fc2
    wgc = jnp.transpose(wg, (1, 0, 2)).reshape(D, T * E)     # column block t = task t's gate
    tw2r = tw2.reshape(T, Th)                                # (Th, 1) columns flattened per task

    operands = (x, w1c, b1c, w2c, eb2, wgc, tw1, tb1, tw2r, tb2)

    flops = (2 * B * D * E * H + 2 * B * D * T * E
             + T * (2 * B * E * H * O + 2 * B * E * O + 2 * B * O * Th + 2 * B * Th))
    transcendentals = T * B * (E + 2)                        # softmax exps + recip + sigmoid
    bytes_accessed = sum(int(a.size) * 4 for a in operands) + B * T * 4

    vmem_spec = pl.BlockSpec(memory_space=pltpu.MemorySpace.VMEM)
    out_bt = pl.pallas_call(
        mmoe_kernel,
        out_shape=jax.ShapeDtypeStruct((B, T), jnp.float32),
        in_specs=[vmem_spec] * 10,
        out_specs=vmem_spec,
        cost_estimate=pl.CostEstimate(flops=flops,
                                      transcendentals=transcendentals,
                                      bytes_accessed=bytes_accessed),
    )(*operands)

    # Match the PyTorch module's per-task (B, 1) outputs, stacked over tasks.
    return jnp.transpose(out_bt)[:, :, None]                 # (tasks, B, 1)


def mmoe_reference(x, params):
    """Pure-JAX reference mirroring the PyTorch forward (eval mode)."""
    (ew1, eb1, ew2, eb2, wg, tw1, tb1, tw2, tb2) = params
    num_experts = ew1.shape[0]
    tasks = wg.shape[0]

    experts_o = []
    for e in range(num_experts):
        h = jnp.maximum(x @ ew1[e] + eb1[e], 0.0)
        experts_o.append(h @ ew2[e] + eb2[e])
    experts_o_tensor = jnp.stack(experts_o)                       # (E, B, O)

    outs = []
    for t in range(tasks):
        gate = jax.nn.softmax(x @ wg[t], axis=1)                  # (B, E)
        weighted = gate.T[:, :, None] * experts_o_tensor          # (E, B, O)
        ti = jnp.sum(weighted, axis=0)                            # (B, O)
        th = jnp.maximum(ti @ tw1[t] + tb1[t], 0.0)
        outs.append(jax.nn.sigmoid(th @ tw2[t] + tb2[t]))         # (B, 1)
    return jnp.stack(outs, axis=0)


def init_params(key, input_size, num_experts, experts_out, experts_hidden,
                towers_hidden, tasks):
    ks = jax.random.split(key, 9)
    s = 0.1
    ew1 = s * jax.random.normal(ks[0], (num_experts, input_size, experts_hidden), jnp.float32)
    eb1 = s * jax.random.normal(ks[1], (num_experts, experts_hidden), jnp.float32)
    ew2 = s * jax.random.normal(ks[2], (num_experts, experts_hidden, experts_out), jnp.float32)
    eb2 = s * jax.random.normal(ks[3], (num_experts, experts_out), jnp.float32)
    wg  = jax.random.normal(ks[4], (tasks, input_size, num_experts), jnp.float32)
    tw1 = s * jax.random.normal(ks[5], (tasks, experts_out, towers_hidden), jnp.float32)
    tb1 = s * jax.random.normal(ks[6], (tasks, towers_hidden), jnp.float32)
    tw2 = s * jax.random.normal(ks[7], (tasks, towers_hidden, 1), jnp.float32)
    tb2 = s * jax.random.normal(ks[8], (tasks, 1), jnp.float32)
    return (ew1, eb1, ew2, eb2, wg, tw1, tb1, tw2, tb2)


if __name__ == "__main__":
    # Small shapes consistent with the module's forward. E*H = 128 (lane-aligned).
    batch = 8
    input_size = 32
    num_experts = 4
    experts_out = 16
    experts_hidden = 32
    towers_hidden = 8
    tasks = 2

    key = jax.random.PRNGKey(0)
    kx, kp = jax.random.split(key)
    x = jax.random.normal(kx, (batch, input_size), jnp.float32)
    params = init_params(kp, input_size, num_experts, experts_out,
                         experts_hidden, towers_hidden, tasks)

    out = mmoe_forward(x, params)
    out = jax.block_until_ready(out)

    ref = mmoe_reference(x, params)
    assert out.shape == (tasks, batch, 1)
    # approx EUP reciprocal in the softmax + reassociated expert sum -> ~1e-4 level diffs
    assert jnp.allclose(out, ref, atol=1e-3, rtol=1e-3), "mismatch vs reference"

    print("KERNEL_OK")
</pallas_src>

<mosaic_0001>
module attributes {stable_mosaic.version = 11 : i64} {
  func.func @mmoe_kernel(%arg0: memref<8x32xf32, #tpu.memory_space<vmem>>, %arg1: memref<32x128xf32, #tpu.memory_space<vmem>>, %arg2: memref<1x128xf32, #tpu.memory_space<vmem>>, %arg3: memref<128x16xf32, #tpu.memory_space<vmem>>, %arg4: memref<4x16xf32, #tpu.memory_space<vmem>>, %arg5: memref<32x8xf32, #tpu.memory_space<vmem>>, %arg6: memref<2x16x8xf32, #tpu.memory_space<vmem>>, %arg7: memref<2x8xf32, #tpu.memory_space<vmem>>, %arg8: memref<2x8xf32, #tpu.memory_space<vmem>>, %arg9: memref<2x1xf32, #tpu.memory_space<vmem>>, %arg10: memref<8x2xf32, #tpu.memory_space<vmem>>) attributes {dimension_semantics = [], scalar_prefetch = 0 : i64, scratch_operands = 0 : i64, tpu.core_type = #tpu.core_type<tc>} {
    %c0 = arith.constant 0 : index
    %c0_0 = arith.constant 0 : index
    %0 = vector.load %arg0[%c0, %c0_0] : memref<8x32xf32, #tpu.memory_space<vmem>>, vector<8x32xf32>
    %c0_1 = arith.constant 0 : index
    %c0_2 = arith.constant 0 : index
    %1 = vector.load %arg1[%c0_1, %c0_2] : memref<32x128xf32, #tpu.memory_space<vmem>>, vector<32x128xf32>
    %cst = arith.constant dense<0.000000e+00> : vector<8x128xf32>
    %2 = tpu.matmul %0, %1, %cst {dimension_numbers = #tpu.dot_dimension_numbers<[1], [0], [0], [1], [0, 0, 1, 1], [], []>} : vector<8x32xf32>, vector<32x128xf32>, vector<8x128xf32> -> vector<8x128xf32>
    %c0_3 = arith.constant 0 : index
    %c0_4 = arith.constant 0 : index
    %3 = vector.load %arg2[%c0_3, %c0_4] : memref<1x128xf32, #tpu.memory_space<vmem>>, vector<1x128xf32>
    %4 = vector.broadcast %3 : vector<1x128xf32> to vector<8x128xf32>
    %5 = arith.addf %2, %4 : vector<8x128xf32>
    %cst_5 = arith.constant 0.000000e+00 : f32
    %6 = vector.broadcast %cst_5 : f32 to vector<8x128xf32>
    %7 = arith.maximumf %5, %6 : vector<8x128xf32>
    %c0_6 = arith.constant 0 : index
    %c0_7 = arith.constant 0 : index
    %8 = vector.load %arg5[%c0_6, %c0_7] : memref<32x8xf32, #tpu.memory_space<vmem>>, vector<32x8xf32>
    %cst_8 = arith.constant dense<0.000000e+00> : vector<8x8xf32>
    %9 = tpu.matmul %0, %8, %cst_8 {dimension_numbers = #tpu.dot_dimension_numbers<[1], [0], [0], [1], [0, 0, 1, 1], [], []>} : vector<8x32xf32>, vector<32x8xf32>, vector<8x8xf32> -> vector<8x8xf32>
    %c0_9 = arith.constant 0 : index
    %c0_10 = arith.constant 0 : index
    %10 = vector.load %arg3[%c0_9, %c0_10] : memref<128x16xf32, #tpu.memory_space<vmem>>, vector<128x16xf32>
    %c0_11 = arith.constant 0 : index
    %c0_12 = arith.constant 0 : index
    %11 = vector.load %arg4[%c0_11, %c0_12] : memref<4x16xf32, #tpu.memory_space<vmem>>, vector<4x16xf32>
    %12 = vector.extract_strided_slice %9 {offsets = [0, 0], sizes = [8, 4], strides = [1, 1]} : vector<8x8xf32> to vector<8x4xf32>
    %cst_13 = arith.constant dense<0xFF800000> : vector<8xf32>
    %13 = vector.multi_reduction <maximumf>, %12, %cst_13 [1] : vector<8x4xf32> to vector<8xf32>
    %14 = vector.shape_cast %13 : vector<8xf32> to vector<8x1xf32>
    %15 = vector.broadcast %14 : vector<8x1xf32> to vector<8x4xf32>
    %16 = arith.subf %12, %15 : vector<8x4xf32>
    %17 = math.exp %16 : vector<8x4xf32>
    %cst_14 = arith.constant dense<0.000000e+00> : vector<8xf32>
    %18 = vector.multi_reduction <add>, %17, %cst_14 [1] : vector<8x4xf32> to vector<8xf32>
    %19 = vector.shape_cast %18 : vector<8xf32> to vector<8x1xf32>
    %20 = tpu.reciprocal %19 {approx = true} : vector<8x1xf32> -> vector<8x1xf32>
    %21 = vector.broadcast %20 : vector<8x1xf32> to vector<8x4xf32>
    %22 = arith.mulf %17, %21 : vector<8x4xf32>
    %23 = vector.extract_strided_slice %7 {offsets = [0, 0], sizes = [8, 32], strides = [1, 1]} : vector<8x128xf32> to vector<8x32xf32>
    %24 = vector.extract_strided_slice %22 {offsets = [0, 0], sizes = [8, 1], strides = [1, 1]} : vector<8x4xf32> to vector<8x1xf32>
    %25 = vector.broadcast %24 : vector<8x1xf32> to vector<8x32xf32>
    %26 = arith.mulf %23, %25 : vector<8x32xf32>
    %27 = vector.extract_strided_slice %7 {offsets = [0, 32], sizes = [8, 32], strides = [1, 1]} : vector<8x128xf32> to vector<8x32xf32>
    %28 = vector.extract_strided_slice %22 {offsets = [0, 1], sizes = [8, 1], strides = [1, 1]} : vector<8x4xf32> to vector<8x1xf32>
    %29 = vector.broadcast %28 : vector<8x1xf32> to vector<8x32xf32>
    %30 = arith.mulf %27, %29 : vector<8x32xf32>
    %31 = vector.extract_strided_slice %7 {offsets = [0, 64], sizes = [8, 32], strides = [1, 1]} : vector<8x128xf32> to vector<8x32xf32>
    %32 = vector.extract_strided_slice %22 {offsets = [0, 2], sizes = [8, 1], strides = [1, 1]} : vector<8x4xf32> to vector<8x1xf32>
    %33 = vector.broadcast %32 : vector<8x1xf32> to vector<8x32xf32>
    %34 = arith.mulf %31, %33 : vector<8x32xf32>
    %35 = vector.extract_strided_slice %7 {offsets = [0, 96], sizes = [8, 32], strides = [1, 1]} : vector<8x128xf32> to vector<8x32xf32>
    %36 = vector.extract_strided_slice %22 {offsets = [0, 3], sizes = [8, 1], strides = [1, 1]} : vector<8x4xf32> to vector<8x1xf32>
    %37 = vector.broadcast %36 : vector<8x1xf32> to vector<8x32xf32>
    %38 = arith.mulf %35, %37 : vector<8x32xf32>
    %39 = tpu.concatenate %26, %30, %34, %38 in 1 : vector<8x32xf32>, vector<8x32xf32>, vector<8x32xf32>, vector<8x32xf32> -> vector<8x128xf32>
    %cst_15 = arith.constant dense<0.000000e+00> : vector<8x16xf32>
    %40 = tpu.matmul %39, %10, %cst_15 {dimension_numbers = #tpu.dot_dimension_numbers<[1], [0], [0], [1], [0, 0, 1, 1], [], []>} : vector<8x128xf32>, vector<128x16xf32>, vector<8x16xf32> -> vector<8x16xf32>
    %cst_16 = arith.constant dense<0.000000e+00> : vector<8x16xf32>
    %41 = tpu.matmul %22, %11, %cst_16 {dimension_numbers = #tpu.dot_dimension_numbers<[1], [0], [0], [1], [0, 0, 1, 1], [], []>} : vector<8x4xf32>, vector<4x16xf32>, vector<8x16xf32> -> vector<8x16xf32>
    %42 = arith.addf %40, %41 : vector<8x16xf32>
    %c0_17 = arith.constant 0 : index
    %c0_18 = arith.constant 0 : index
    %c0_19 = arith.constant 0 : index
    %43 = vector.load %arg6[%c0_17, %c0_18, %c0_19] : memref<2x16x8xf32, #tpu.memory_space<vmem>>, vector<1x16x8xf32>
    %44 = vector.shape_cast %43 : vector<1x16x8xf32> to vector<16x8xf32>
    %cst_20 = arith.constant dense<0.000000e+00> : vector<8x8xf32>
    %45 = tpu.matmul %42, %44, %cst_20 {dimension_numbers = #tpu.dot_dimension_numbers<[1], [0], [0], [1], [0, 0, 1, 1], [], []>} : vector<8x16xf32>, vector<16x8xf32>, vector<8x8xf32> -> vector<8x8xf32>
    %c0_21 = arith.constant 0 : index
    %c0_22 = arith.constant 0 : index
    %46 = vector.load %arg7[%c0_21, %c0_22] : memref<2x8xf32, #tpu.memory_space<vmem>>, vector<1x8xf32>
    %47 = vector.broadcast %46 : vector<1x8xf32> to vector<8x8xf32>
    %48 = arith.addf %45, %47 : vector<8x8xf32>
    %cst_23 = arith.constant 0.000000e+00 : f32
    %49 = vector.broadcast %cst_23 : f32 to vector<8x8xf32>
    %50 = arith.maximumf %48, %49 : vector<8x8xf32>
    %c0_24 = arith.constant 0 : index
    %c0_25 = arith.constant 0 : index
    %51 = vector.load %arg8[%c0_24, %c0_25] : memref<2x8xf32, #tpu.memory_space<vmem>>, vector<1x8xf32>
    %52 = vector.broadcast %51 : vector<1x8xf32> to vector<8x8xf32>
    %53 = arith.mulf %50, %52 : vector<8x8xf32>
    %cst_26 = arith.constant dense<0.000000e+00> : vector<8xf32>
    %54 = vector.multi_reduction <add>, %53, %cst_26 [1] : vector<8x8xf32> to vector<8xf32>
    %55 = vector.shape_cast %54 : vector<8xf32> to vector<8x1xf32>
    %c0_27 = arith.constant 0 : index
    %c0_28 = arith.constant 0 : index
    %56 = vector.load %arg9[%c0_27, %c0_28] : memref<2x1xf32, #tpu.memory_space<vmem>>, vector<1x1xf32>
    %57 = vector.broadcast %56 : vector<1x1xf32> to vector<8x1xf32>
    %58 = arith.addf %55, %57 : vector<8x1xf32>
    %cst_29 = arith.constant 0.000000e+00 : f32
    %59 = vector.broadcast %cst_29 : f32 to vector<8x1xf32>
    %60 = arith.subf %59, %58 : vector<8x1xf32>
    %61 = math.exp %60 : vector<8x1xf32>
    %cst_30 = arith.constant 1.000000e+00 : f32
    %62 = vector.broadcast %cst_30 : f32 to vector<8x1xf32>
    %63 = arith.addf %62, %61 : vector<8x1xf32>
    %cst_31 = arith.constant 1.000000e+00 : f32
    %64 = vector.broadcast %cst_31 : f32 to vector<8x1xf32>
    %65 = arith.divf %64, %63 : vector<8x1xf32>
    %66 = vector.extract_strided_slice %9 {offsets = [0, 4], sizes = [8, 4], strides = [1, 1]} : vector<8x8xf32> to vector<8x4xf32>
    %cst_32 = arith.constant dense<0xFF800000> : vector<8xf32>
    %67 = vector.multi_reduction <maximumf>, %66, %cst_32 [1] : vector<8x4xf32> to vector<8xf32>
    %68 = vector.shape_cast %67 : vector<8xf32> to vector<8x1xf32>
    %69 = vector.broadcast %68 : vector<8x1xf32> to vector<8x4xf32>
    %70 = arith.subf %66, %69 : vector<8x4xf32>
    %71 = math.exp %70 : vector<8x4xf32>
    %cst_33 = arith.constant dense<0.000000e+00> : vector<8xf32>
    %72 = vector.multi_reduction <add>, %71, %cst_33 [1] : vector<8x4xf32> to vector<8xf32>
    %73 = vector.shape_cast %72 : vector<8xf32> to vector<8x1xf32>
    %74 = tpu.reciprocal %73 {approx = true} : vector<8x1xf32> -> vector<8x1xf32>
    %75 = vector.broadcast %74 : vector<8x1xf32> to vector<8x4xf32>
    %76 = arith.mulf %71, %75 : vector<8x4xf32>
    %77 = vector.extract_strided_slice %7 {offsets = [0, 0], sizes = [8, 32], strides = [1, 1]} : vector<8x128xf32> to vector<8x32xf32>
    %78 = vector.extract_strided_slice %76 {offsets = [0, 0], sizes = [8, 1], strides = [1, 1]} : vector<8x4xf32> to vector<8x1xf32>
    %79 = vector.broadcast %78 : vector<8x1xf32> to vector<8x32xf32>
    %80 = arith.mulf %77, %79 : vector<8x32xf32>
    %81 = vector.extract_strided_slice %7 {offsets = [0, 32], sizes = [8, 32], strides = [1, 1]} : vector<8x128xf32> to vector<8x32xf32>
    %82 = vector.extract_strided_slice %76 {offsets = [0, 1], sizes = [8, 1], strides = [1, 1]} : vector<8x4xf32> to vector<8x1xf32>
    %83 = vector.broadcast %82 : vector<8x1xf32> to vector<8x32xf32>
    %84 = arith.mulf %81, %83 : vector<8x32xf32>
    %85 = vector.extract_strided_slice %7 {offsets = [0, 64], sizes = [8, 32], strides = [1, 1]} : vector<8x128xf32> to vector<8x32xf32>
    %86 = vector.extract_strided_slice %76 {offsets = [0, 2], sizes = [8, 1], strides = [1, 1]} : vector<8x4xf32> to vector<8x1xf32>
    %87 = vector.broadcast %86 : vector<8x1xf32> to vector<8x32xf32>
    %88 = arith.mulf %85, %87 : vector<8x32xf32>
    %89 = vector.extract_strided_slice %7 {offsets = [0, 96], sizes = [8, 32], strides = [1, 1]} : vector<8x128xf32> to vector<8x32xf32>
    %90 = vector.extract_strided_slice %76 {offsets = [0, 3], sizes = [8, 1], strides = [1, 1]} : vector<8x4xf32> to vector<8x1xf32>
    %91 = vector.broadcast %90 : vector<8x1xf32> to vector<8x32xf32>
    %92 = arith.mulf %89, %91 : vector<8x32xf32>
    %93 = tpu.concatenate %80, %84, %88, %92 in 1 : vector<8x32xf32>, vector<8x32xf32>, vector<8x32xf32>, vector<8x32xf32> -> vector<8x128xf32>
    %cst_34 = arith.constant dense<0.000000e+00> : vector<8x16xf32>
    %94 = tpu.matmul %93, %10, %cst_34 {dimension_numbers = #tpu.dot_dimension_numbers<[1], [0], [0], [1], [0, 0, 1, 1], [], []>} : vector<8x128xf32>, vector<128x16xf32>, vector<8x16xf32> -> vector<8x16xf32>
    %cst_35 = arith.constant dense<0.000000e+00> : vector<8x16xf32>
    %95 = tpu.matmul %76, %11, %cst_35 {dimension_numbers = #tpu.dot_dimension_numbers<[1], [0], [0], [1], [0, 0, 1, 1], [], []>} : vector<8x4xf32>, vector<4x16xf32>, vector<8x16xf32> -> vector<8x16xf32>
    %96 = arith.addf %94, %95 : vector<8x16xf32>
    %c1 = arith.constant 1 : index
    %c0_36 = arith.constant 0 : index
    %c0_37 = arith.constant 0 : index
    %97 = vector.load %arg6[%c1, %c0_36, %c0_37] : memref<2x16x8xf32, #tpu.memory_space<vmem>>, vector<1x16x8xf32>
    %98 = vector.shape_cast %97 : vector<1x16x8xf32> to vector<16x8xf32>
    %cst_38 = arith.constant dense<0.000000e+00> : vector<8x8xf32>
    %99 = tpu.matmul %96, %98, %cst_38 {dimension_numbers = #tpu.dot_dimension_numbers<[1], [0], [0], [1], [0, 0, 1, 1], [], []>} : vector<8x16xf32>, vector<16x8xf32>, vector<8x8xf32> -> vector<8x8xf32>
    %c1_39 = arith.constant 1 : index
    %c0_40 = arith.constant 0 : index
    %100 = vector.load %arg7[%c1_39, %c0_40] : memref<2x8xf32, #tpu.memory_space<vmem>>, vector<1x8xf32>
    %101 = vector.broadcast %100 : vector<1x8xf32> to vector<8x8xf32>
    %102 = arith.addf %99, %101 : vector<8x8xf32>
    %cst_41 = arith.constant 0.000000e+00 : f32
    %103 = vector.broadcast %cst_41 : f32 to vector<8x8xf32>
    %104 = arith.maximumf %102, %103 : vector<8x8xf32>
    %c1_42 = arith.constant 1 : index
    %c0_43 = arith.constant 0 : index
    %105 = vector.load %arg8[%c1_42, %c0_43] : memref<2x8xf32, #tpu.memory_space<vmem>>, vector<1x8xf32>
    %106 = vector.broadcast %105 : vector<1x8xf32> to vector<8x8xf32>
    %107 = arith.mulf %104, %106 : vector<8x8xf32>
    %cst_44 = arith.constant dense<0.000000e+00> : vector<8xf32>
    %108 = vector.multi_reduction <add>, %107, %cst_44 [1] : vector<8x8xf32> to vector<8xf32>
    %109 = vector.shape_cast %108 : vector<8xf32> to vector<8x1xf32>
    %c1_45 = arith.constant 1 : index
    %c0_46 = arith.constant 0 : index
    %110 = vector.load %arg9[%c1_45, %c0_46] : memref<2x1xf32, #tpu.memory_space<vmem>>, vector<1x1xf32>
    %111 = vector.broadcast %110 : vector<1x1xf32> to vector<8x1xf32>
    %112 = arith.addf %109, %111 : vector<8x1xf32>
    %cst_47 = arith.constant 0.000000e+00 : f32
    %113 = vector.broadcast %cst_47 : f32 to vector<8x1xf32>
    %114 = arith.subf %113, %112 : vector<8x1xf32>
    %115 = math.exp %114 : vector<8x1xf32>
    %cst_48 = arith.constant 1.000000e+00 : f32
    %116 = vector.broadcast %cst_48 : f32 to vector<8x1xf32>
    %117 = arith.addf %116, %115 : vector<8x1xf32>
    %cst_49 = arith.constant 1.000000e+00 : f32
    %118 = vector.broadcast %cst_49 : f32 to vector<8x1xf32>
    %119 = arith.divf %118, %117 : vector<8x1xf32>
    %120 = tpu.concatenate %65, %119 in 1 : vector<8x1xf32>, vector<8x1xf32> -> vector<8x2xf32>
    %c0_50 = arith.constant 0 : index
    %c0_51 = arith.constant 0 : index
    %121 = vector.load %arg10[%c0_50, %c0_51] : memref<8x2xf32, #tpu.memory_space<vmem>>, vector<8x2xf32>
    tpu.vector_store %arg10[%c0_50, %c0_51], %120 {strides = array<i32>} : memref<8x2xf32, #tpu.memory_space<vmem>>, vector<8x2xf32>,
    return
  }
}

</mosaic_0001>

<bundles_post_ra>
// kernel: tpu_custom_call.1
= control target key start
LH: loop header
LB: loop body
LE: loop exit
PB: predicated region body
PF: predicated region fallthrough
CT: control target
= control target key end

     0   :  { %v1094_v0 = vmov 0.0|0.0   ;;  %vm1095_vm0 = vmmov 0   ;;  %v1096_v4 = vmov 0.0   ;;  %vm47_vm1 = vcmask 261120   ;;  %s1101_s27 = smov 124   ;;  %s1384_s5 = inlined_call_operand.vmem [shape: f32[32,8], index: 5, kind: input, shape index: {}]   ;;  %s1385_s0 = inlined_call_operand.vmem [shape: f32[8,32], index: 0, kind: input, shape index: {}]   ;;  %s1386_s1 = inlined_call_operand.vmem [shape: f32[32,128], index: 1, kind: input, shape index: {}]   ;;  %s1387_s4 = inlined_call_operand.vmem [shape: f32[4,16], index: 4, kind: input, shape index: {}]   ;;  %s1388_s3 = inlined_call_operand.vmem [shape: f32[128,16], index: 3, kind: input, shape index: {}]   ;;  %s1389_s2 = inlined_call_operand.vmem [shape: f32[1,128], index: 2, kind: input, shape index: {}]   ;;  %s1390_s6 = inlined_call_operand.vmem [shape: f32[2,16,8], index: 6, kind: input, shape index: {}]   ;;  %s1391_s7 = inlined_call_operand.vmem [shape: f32[2,8], index: 7, kind: input, shape index: {}]   ;;  %s1392_s8 = inlined_call_operand.vmem [shape: f32[2,8], index: 8, kind: input, shape index: {}]   ;;  %s1393_s9 = inlined_call_operand.vmem [shape: f32[2,1], index: 9, kind: input, shape index: {}]   ;;  %s1394_s10 = inlined_call_operand.vmem [shape: f32[8,2], index: 10, kind: output, shape index: {}]  }
   0x1   :  { %993 = vmatprep.subr.bf16.mxu1 %v1094_v0  ;;  %v122_v1 = vld [vmem:[%s1384_s5] sm:$0xff]  ;;  %v123_v2 = vld [vmem:[%s1384_s5 + $0x8] sm:$0xff]  ;;  %v124_v3 = vld [vmem:[%s1384_s5 + $0x10] sm:$0xff]  ;;  %890 = vmatprep.mubr.msk.f32.mxu1 %vm1095_vm0, %v1096_v4  ;;  %vm501_vm2 = vcmask 64544   ;;  %vm213_vm3 = vcmask 31744   ;;  %vm253_vm4 = vcmask 1043456  }
   0x2   :  { %v994_v5 = vpack.c.bf16 %v123_v2, %v122_v1  ;;  %v125_v6 = vld [vmem:[%s1384_s5 + $0x18] sm:$0xff]  ;;  %987 = vmatprep.subr.bf16.mxu0 %v1094_v0  ;;  %879 = vmatprep.mubr.msk.f32.mxu0 %vm1095_vm0, %v1096_v4  ;;  %v35_v8 = vld [vmem:[%s1385_s0] sm:$0xff]  ;;  %v37_v14 = vld [vmem:[%s1386_s1 + $0x8] sm:$0xff]  ;;  %v1097_v25 = vmov 1   ;;  %v1098_v26 = vmov 0   ;;  %v1099_v43 = vmov 2  }
   0x3   :  { %v997_v7 = vpack.c.bf16 %v125_v6, %v124_v3  ;;  %v36_v13 = vld [vmem:[%s1386_s1] sm:$0xff]  ;;  %v38_v15 = vld [vmem:[%s1386_s1 + $0x10] sm:$0xff]  ;;  %v39_v17 = vld [vmem:[%s1386_s1 + $0x18] sm:$0xff]  ;;  %1071 = vset.pattern.permute.xlu0 %v1097_v25  ;;  %1070 = vset.pattern.permute.xlu1 %v1098_v26  ;;  %v1100_v47 = vmov 3   ;;  %vm247_vm5 = vcmask 523264   ;;  %vm249_vm6 = vcmask 785408  }
   0x4   :  { %995 = vmatpush3.bf16.msra.mxu1 %v994_v5  ;;  %v988_v16 = vpack.c.bf16 %v37_v14, %v36_v13  ;;  %v991_v18 = vpack.c.bf16 %v39_v17, %v38_v15  ;;  %v1210_v24 = vld [vmem:[%s1387_s4] sm:$0xf]  ;;  %v197_v33 = vld [vmem:[%s1388_s3 + $0x8] sm:$0xff]  ;;  %v198_v38 = vld [vmem:[%s1388_s3 + $0x10] sm:$0xff]  ;;  %v1103_v17 = vmov 4   ;;  %v1104_v25 = vmov 5  }
   0x5   :  { %996 = vmatprep.subr.bf16.mxu1 %v1094_v0  ;;  %v196_v32 = vld [vmem:[%s1388_s3] sm:$0xff]  ;;  %v199_v39 = vld [vmem:[%s1388_s3 + $0x18] sm:$0xff]  ;;  %v201_v42 = vld [vmem:[%s1388_s3 + $0x28] sm:$0xff]  ;;  %v1105_v26 = vmov 7   ;;  %vm404_vm7 = vcmask 130048   ;;  %vm485_vm8 = vcmask 64512  }
   0x6   :  { %989 = vmatpush3.bf16.msra.mxu0 %v988_v16  ;;  %v1223_v36 = vpack.c.bf16 %v197_v33, %v196_v32  ;;  %v1233_v40 = vpack.c.bf16 %v199_v39, %v198_v38  ;;  %v200_v41 = vld [vmem:[%s1388_s3 + $0x20] sm:$0xff]  ;;  %v202_v45 = vld [vmem:[%s1388_s3 + $0x30] sm:$0xff]  ;;  %v203_v46 = vld [vmem:[%s1388_s3 + $0x38] sm:$0xff]  ;;  %v1102_v16 = vmov 6   ;;  %vm792_vm9 = vcmask 7168  }
   0x7   :  { %990 = vmatprep.subr.bf16.mxu0 %v1094_v0  ;;  %v1245_v44 = vpack.c.bf16 %v201_v42, %v200_v41  ;;  %v1255_v48 = vpack.c.bf16 %v203_v46, %v202_v45  ;;  %v204_v49 = vld [vmem:[%s1388_s3 + $0x40] sm:$0xff]  ;;  %v205_v50 = vld [vmem:[%s1388_s3 + $0x48] sm:$0xff]  ;;  %v206_v53 = vld [vmem:[%s1388_s3 + $0x50] sm:$0xff]  ;;  %vm794_vm10 = vcmask 15360  }
   0x8   :  { %998 = vmatpush3.bf16.msra.mxu1 %v997_v7  ;;  %v1266_v52 = vpack.c.bf16 %v205_v50, %v204_v49  ;;  %v207_v54 = vld [vmem:[%s1388_s3 + $0x58] sm:$0xff]  ;;  %v208_v56 = vld [vmem:[%s1388_s3 + $0x60] sm:$0xff]  ;;  %v209_v57 = vld [vmem:[%s1388_s3 + $0x68] sm:$0xff] }
   0x9   :  { %1023 = vmatprep.subr.bf16.mxu1 %v1094_v0  ;;  %v1276_v55 = vpack.c.bf16 %v207_v54, %v206_v53  ;;  %v1286_v58 = vpack.c.bf16 %v209_v57, %v208_v56  ;;  %v210_v59 = vld [vmem:[%s1388_s3 + $0x70] sm:$0xff]  ;;  %v211_v60 = vld [vmem:[%s1388_s3 + $0x78] sm:$0xff]  ;;  %v800_v62 = vld [vmem:[%s1389_s2] ss:$0 sm:$0xff] }
   0xa   :  { %992 = vmatpush3.bf16.msra.mxu0 %v991_v18  ;;  %v1296_v61 = vpack.c.bf16 %v211_v60, %v210_v59  ;;  %v397_v18 = vld [vmem:[%s1390_s6] sm:$0xff]  ;;  %v811_v39 = vld [vmem:[%s1390_s6 + $0x10] sm:$0xff] }
   0xb   :  { %891 = vmatmul.mubr.msk.f32.vlgmr.msra.gmra.mrb[0].mxu1 %vm47_vm1, %v35_v8  ;;  %893 = vmatprep.subr.mxu0 %v1096_v4  ;;  %v807_v45 = vld [vmem:[%s1392_s8] ss:$0 sm:$0xff]  ;;  %v816_v59 = vld [vmem:[%s1393_s9 + $0x1] ss:$0 sm:$0xff] }
   0xc   :  { %937 = vmatprep.mubr.msk.f32.mxu1 %vm1095_vm0, %v1096_v4 }
   0xd   :  { %880 = vmatmul.mubr.msk.f32.vlgmr.msra.gmra.mrb[0].mxu0 %vm47_vm1, %v35_v8 }
   0xe   :  { %895 = vmatprep.mubr.msk.f32.mxu0 %vm1095_vm0, %v1096_v4  ;;  %894 = vmatpush3.msk.msra.mxu0 %vm253_vm4, %v1210_v24 }
   0xf   :  { %999 = vmatprep.subr.bf16.mxu0 %v1094_v0 }
  0xde   :  { %v192_v9 = vpop.f32.mrb[0].mxu1 }
  0xdf   :  { %v892_v10 = vpop.f32.mrb[1].mxu1  ;;  %v502_v11 = vsel %vm501_vm2, %v192_v9, -inf  ;;  %v214_v12 = vsel %vm213_vm3, %v192_v9, -inf }
  0xe0   :  { %503 = vmax.xlane.f32.xlu1 %v502_v11  ;;  %215 = vmax.xlane.f32.xlu0 %v214_v12  ;;  %v1215_v27 = vpop.f32.mrb[0].mxu0 }
  0xe1   :  { %v881_v28 = vpop.f32.mrb[1].mxu0  ;;  %v118_v63 = vadd.f32 %v800_v62, %v1215_v27 }
  0xe3   :  { %v1305_v2 = vmax.f32 %v118_v63, 0.0 }
 0x16d   :  { %v216_v19 = vpop.xlane.xlu0 %215  ;;  %v504_v30 = vpop.xlane.xlu1 %503 }
 0x16e   :  { %v217_v20 = vsub.f32 %v192_v9, %v216_v19  ;;  %v505_v31 = vsub.f32 %v192_v9, %v504_v30  ;;  %v398_v19 = vld [vmem:[%s1390_s6 + $0x8] sm:$0xff] }
 0x170   :  { %v218_v21 = vmul.f32 1.442695, %v217_v20  ;;  %v506_v37 = vmul.f32 1.442695, %v505_v31  ;;  %v1024_v20 = vpack.c.bf16 %v398_v19, %v397_v18 }
 0x172   :  { %1078 = vpow2.f32 %v218_v21  ;;  %1025 = vmatpush3.bf16.msra.mxu1 %v1024_v20 }
 0x173   :  { %940 = vmatprep.subr.mxu1 %v1096_v4 }
 0x17c   :  { %v1079_v22 = vpop.eup %1078 }
 0x17d   :  { %v220_v23 = vsel %vm213_vm3, %v1079_v22, 0.0 }
 0x17e   :  { %221 = vadd.xlane.f32.xlu0 %v220_v23 }
 0x20b   :  { %v222_v29 = vpop.xlane.xlu0 %221 }
 0x20c   :  { %1080 = vrcp.f32 %v222_v29 }
 0x20d   :  { %1082 = vpow2.f32 %v506_v37 }
 0x216   :  { %v1081_v34 = vpop.eup %1080 }
 0x217   :  { %v224_v35 = vmul.f32 %v1081_v34, %v1079_v22  ;;  %v1083_v51 = vpop.eup %1082 }
 0x219   :  { %232 = vperm.xlu0 %1071, %v224_v35   ;;  %227 = vperm.xlu1 %1070, %v224_v35  }
 0x21a   :  { %896 = vmatmul.mubr.msk.f32.vlgmr.msra.gmra.mrb[2].mxu0 %vm213_vm3, %v224_v35 }
 0x21b   :  { %1001 = vmatpush3.bf16.msra.mxu0 %v1223_v36  ;;  %930 = vmatprep.mubr.msk.f32.mxu0 %vm1095_vm0, %v1096_v4 }
 0x21c   :  { %1002 = vmatprep.subr.bf16.mxu0 %v1094_v0 }
 0x21d   :  { %1072 = vset.pattern.permute.xlu1 %v1099_v43  ;;  %1074 = vset.pattern.permute.xlu0 %v1103_v17 }
 0x21e   :  { %237 = vperm.xlu1 %1072, %v224_v35  }
 0x21f   :  { %1004 = vmatpush3.bf16.msra.mxu0 %v1233_v40 }
 0x220   :  { %1005 = vmatprep.subr.bf16.mxu0 %v1094_v0 }
 0x222   :  { %1073 = vset.pattern.permute.xlu1 %v1100_v47 }
 0x223   :  { %242 = vperm.xlu1 %1073, %v224_v35   ;;  %1007 = vmatpush3.bf16.msra.mxu0 %v1245_v44 }
 0x224   :  { %1008 = vmatprep.subr.bf16.mxu0 %v1094_v0 }
 0x227   :  { %509 = vrot.lane.b32.xlu1 %v1083_v51, %s1101_s27  ;;  %1010 = vmatpush3.bf16.msra.mxu0 %v1255_v48 }
 0x228   :  { %1011 = vmatprep.subr.bf16.mxu0 %v1094_v0  ;;  %1076 = vset.pattern.permute.xlu1 %v1102_v16 }
 0x22b   :  { %1013 = vmatpush3.bf16.msra.mxu0 %v1266_v52 }
 0x22c   :  { %1014 = vmatprep.subr.bf16.mxu0 %v1094_v0 }
 0x22f   :  { %1016 = vmatpush3.bf16.msra.mxu0 %v1276_v55 }
 0x230   :  { %1017 = vmatprep.subr.bf16.mxu0 %v1094_v0 }
 0x233   :  { %1019 = vmatpush3.bf16.msra.mxu0 %v1286_v58 }
 0x234   :  { %1020 = vmatprep.subr.bf16.mxu0 %v1094_v0 }
 0x237   :  { %1022 = vmatpush3.bf16.msra.mxu0 %v1296_v61 }
 0x238   :  { %1050 = vmatprep.subr.bf16.mxu0 %v1094_v0 }
 0x298   :  { %v228_v1 = vpop.permute.xlu1 %227  ;;  %v233_v3 = vpop.permute.xlu0 %232 }
 0x299   :  { %v235_v6 = vmul.f32 %v233_v3, %v1305_v2  ;;  %v230_v7 = vmul.f32 %v228_v1, %v1305_v2 }
 0x29b   :  { %v246_v10 = vsel %vm47_vm1, %v230_v7, %v235_v6 }
 0x29d   :  { %v238_v5 = vpop.permute.xlu1 %237 }
 0x29e   :  { %v240_v8 = vmul.f32 %v238_v5, %v1305_v2  ;;  %v808_v5 = vld [vmem:[%s1393_s9] ss:$0 sm:$0xff] }
 0x2a0   :  { %v248_v12 = vsel %vm247_vm5, %v246_v10, %v240_v8 }
 0x2a2   :  { %v243_v9 = vpop.permute.xlu1 %242 }
 0x2a3   :  { %v245_v11 = vmul.f32 %v243_v9, %v1305_v2 }
 0x2a5   :  { %v250_v13 = vsel %vm249_vm6, %v248_v12, %v245_v11 }
 0x2a6   :  { %v510_v14 = vpop.permute.xlu1 %509  ;;  %931 = vmatmul.mubr.f32.vlgmr.msra.gmra.mrb[2].mxu0 %v250_v13 }
 0x2a7   :  { %v512_v15 = vsel %vm213_vm3, %v510_v14, 0.0  ;;  %984 = vmatprep.mubr.msk.f32.mxu0 %vm1095_vm0, %v1096_v4 }
 0x2a8   :  { %513 = vadd.xlane.f32.xlu1 %v512_v15 }
 0x335   :  { %v514_v21 = vpop.xlane.xlu1 %513 }
 0x336   :  { %1084 = vrcp.f32 %v514_v21 }
 0x340   :  { %v1085_v22 = vpop.eup %1084 }
 0x341   :  { %v516_v23 = vmul.f32 %v1085_v22, %v1083_v51  ;;  %v813_v51 = vld [vmem:[%s1391_s7 + $0x1] ss:$0 sm:$0xff] }
 0x343   :  { %529 = vperm.xlu1 %1076, %v516_v23   ;;  %541 = vrot.lane.b32.xlu0 %v516_v23, %s1101_s27 }
 0x347   :  { %519 = vperm.xlu0 %1074, %v516_v23  }
 0x34b   :  { %1075 = vset.pattern.permute.xlu0 %v1104_v25 }
 0x34c   :  { %524 = vperm.xlu0 %1075, %v516_v23  }
 0x350   :  { %1077 = vset.pattern.permute.xlu0 %v1105_v26 }
 0x351   :  { %534 = vperm.xlu0 %1077, %v516_v23  }
 0x379   :  { %v393_v27 = vpop.f32.mrb[2].mxu0 }
 0x37a   :  { %v932_v28 = vpop.f32.mrb[3].mxu0  ;;  %938 = vmatmul.mubr.msk.f32.vlgmr.msra.gmra.mrb[2].mxu1 %vm404_vm7, %v393_v27 }
 0x37b   :  { %941 = vmatpush3.msk.msra.mxu1 %vm253_vm4, %v1210_v24  ;;  %942 = vmatprep.mubr.msk.f32.mxu1 %vm1095_vm0, %v1096_v4 }
 0x37c   :  { %1026 = vmatprep.subr.bf16.mxu1 %v1094_v0 }
 0x3b5   :  { %v542_v29 = vpop.permute.xlu0 %541 }
 0x3b6   :  { %943 = vmatmul.mubr.msk.f32.vlgmr.msra.gmra.mrb[4].mxu1 %vm213_vm3, %v542_v29 }
 0x3b7   :  { %1028 = vmatpush3.bf16.msra.mxu1 %v1223_v36  ;;  %977 = vmatprep.mubr.msk.f32.mxu1 %vm1095_vm0, %v1096_v4 }
 0x3b8   :  { %1029 = vmatprep.subr.bf16.mxu1 %v1094_v0 }
 0x3bb   :  { %1031 = vmatpush3.bf16.msra.mxu1 %v1233_v40  ;;  %v812_v40 = vld [vmem:[%s1390_s6 + $0x18] sm:$0xff] }
 0x3bc   :  { %1032 = vmatprep.subr.bf16.mxu1 %v1094_v0  ;;  %v1051_v41 = vpack.c.bf16 %v812_v40, %v811_v39 }
 0x3be   :  { %1052 = vmatpush3.bf16.msra.mxu0 %v1051_v41 }
 0x3bf   :  { %1034 = vmatpush3.bf16.msra.mxu1 %v1245_v44 }
 0x3c0   :  { %1035 = vmatprep.subr.bf16.mxu1 %v1094_v0 }
 0x3c2   :  { %v530_v31 = vpop.permute.xlu1 %529 }
 0x3c3   :  { %1037 = vmatpush3.bf16.msra.mxu1 %v1255_v48  ;;  %v532_v34 = vmul.f32 %v530_v31, %v1305_v2 }
 0x3c4   :  { %1038 = vmatprep.subr.bf16.mxu1 %v1094_v0 }
 0x3c6   :  { %v520_v24 = vpop.permute.xlu0 %519 }
 0x3c7   :  { %1040 = vmatpush3.bf16.msra.mxu1 %v1266_v52  ;;  %v522_v32 = vmul.f32 %v520_v24, %v1305_v2 }
 0x3c8   :  { %1041 = vmatprep.subr.bf16.mxu1 %v1094_v0 }
 0x3cb   :  { %1043 = vmatpush3.bf16.msra.mxu1 %v1276_v55  ;;  %v525_v4 = vpop.permute.xlu0 %524  ;;  %v815_v55 = vld [vmem:[%s1392_s8 + $0x1] ss:$0 sm:$0xff] }
 0x3cc   :  { %v527_v30 = vmul.f32 %v525_v4, %v1305_v2  ;;  %1044 = vmatprep.subr.bf16.mxu1 %v1094_v0 }
 0x3ce   :  { %v538_v33 = vsel %vm47_vm1, %v522_v32, %v527_v30 }
 0x3cf   :  { %1046 = vmatpush3.bf16.msra.mxu1 %v1286_v58  ;;  %v539_v37 = vsel %vm247_vm5, %v538_v33, %v532_v34 }
 0x3d0   :  { %v535_v35 = vpop.permute.xlu0 %534  ;;  %1047 = vmatprep.subr.bf16.mxu1 %v1094_v0  ;;  %v805_v0 = vld [vmem:[%s1391_s7] ss:$0 sm:$0xff]  ;;  %s1106_s7 = smov 1  }
 0x3d1   :  { %v537_v36 = vmul.f32 %v535_v35, %v1305_v2 }
 0x3d3   :  { %1049 = vmatpush3.bf16.msra.mxu1 %v1296_v61  ;;  %v540_v38 = vsel %vm249_vm6, %v539_v37, %v537_v36 }
 0x3d6   :  { %978 = vmatmul.mubr.f32.vlgmr.msra.gmra.mrb[4].mxu1 %v540_v38 }
 0x44d   :  { %v474_v42 = vpop.f32.mrb[2].mxu1 }
 0x44e   :  { %v475_v43 = vadd.f32 %v805_v0, %v474_v42  ;;  %v939_v44 = vpop.f32.mrb[3].mxu1 }
 0x450   :  { %v478_v46 = vmax.f32 %v475_v43, 0.0 }
 0x452   :  { %v484_v47 = vmul.f32 %v807_v45, %v478_v46 }
 0x454   :  { %v486_v48 = vsel %vm485_vm8, %v484_v47, 0.0 }
 0x455   :  { %487 = vadd.xlane.f32.xlu1 %v486_v48 }
 0x4a9   :  { %v681_v49 = vpop.f32.mrb[4].mxu1 }
 0x4aa   :  { %v979_v50 = vpop.f32.mrb[5].mxu1  ;;  %985 = vmatmul.mubr.msk.f32.vlgmr.msra.gmra.mrb[4].mxu0 %vm404_vm7, %v681_v49 }
 0x4e2   :  { %v488_v6 = vpop.xlane.xlu1 %487 }
 0x4e3   :  { %v494_v7 = vadd.f32 %v808_v5, %v488_v6 }
 0x4e5   :  { %v495_v8 = vsub.f32 0.0, %v494_v7 }
 0x4e7   :  { %v496_v9 = vmul.f32 1.442695, %v495_v8 }
 0x57d   :  { %v762_v52 = vpop.f32.mrb[4].mxu0 }
 0x57e   :  { %v763_v53 = vadd.f32 %v813_v51, %v762_v52  ;;  %v986_v54 = vpop.f32.mrb[5].mxu0 }
 0x580   :  { %v766_v56 = vmax.f32 %v763_v53, 0.0 }
 0x582   :  { %v772_v57 = vmul.f32 %v815_v55, %v766_v56 }
 0x584   :  { %v773_v58 = vsel %vm485_vm8, %v772_v57, 0.0 }
 0x585   :  { %774 = vadd.xlane.f32.xlu0 %v773_v58 }
 0x612   :  { %v775_v60 = vpop.xlane.xlu0 %774 }
 0x613   :  { %v781_v61 = vadd.f32 %v816_v59, %v775_v60 }
 0x615   :  { %v782_v62 = vsub.f32 0.0, %v781_v61 }
 0x617   :  { %v783_v63 = vmul.f32 1.442695, %v782_v62 }
 0x619   :  { %1086 = vpow2.f32 %v783_v63 }
 0x623   :  { %v1087_v1 = vpop.eup %1086 }
 0x624   :  { %v785_v2 = vadd.f32 1.0, %v1087_v1 }
 0x626   :  { %1088 = vrcp.f32 %v785_v2 }
 0x627   :  { %1090 = vpow2.f32 %v496_v9 }
 0x630   :  { %v1089_v3 = vpop.eup %1088 }
 0x631   :  { %789 = vrot.lane.b32.xlu0 %v1089_v3, %s1106_s7  ;;  %v1091_v10 = vpop.eup %1090 }
 0x632   :  { %v498_v11 = vadd.f32 1.0, %v1091_v10 }
 0x634   :  { %1092 = vrcp.f32 %v498_v11 }
 0x63e   :  { %v1093_v12 = vpop.eup %1092 }
 0x6a3   :  { %v790_v13 = vpop.permute.xlu0 %789 }
 0x6a4   :  { %v793_v14 = vsel %vm792_vm9, %v1093_v12, %v790_v13 }
 0x6a5   :  { %795 = vst.msk [vmem:[%s1394_s10] sm:$0xff] %vm794_vm10, %v793_v14 }

</bundles_post_ra>
